<compile_context>
chip_gen: v5e
topology: v5e:2x2
jax: 0.10.0
libtpu: 0.0.40
codegen_flags: <defaults>
</compile_context>

<pallas_src>
import functools

import jax
import jax.numpy as jnp
from jax.experimental import pallas as pl
from jax.experimental.pallas import tpu as pltpu


def _round_up(a, b):
    return (a + b - 1) // b * b


def _geglu_kernel(x_ref, wh_ref, wg_ref, bh_ref, bg_ref, o_ref, acc_h, acc_g):
    # x_ref:  (tm, tk)      VMEM (bf16 or f32 operands)
    # wh_ref: (tk, tn)      VMEM  -- "h"    half of the projection weight
    # wg_ref: (tk, tn)      VMEM  -- "gate" half of the projection weight
    # bh_ref: (1, tn)       VMEM  f32 bias halves
    # bg_ref: (1, tn)       VMEM
    # o_ref:  (tm, tn)      VMEM  output tile
    # acc_h/acc_g: (tm, tn) f32 accumulator scratch, resident across the K axis
    k = pl.program_id(2)

    xv = x_ref[...]
    ph = jnp.dot(xv, wh_ref[...], preferred_element_type=jnp.float32)
    pg = jnp.dot(xv, wg_ref[...], preferred_element_type=jnp.float32)

    @pl.when(k == 0)
    def _():
        # Write directly: avoids zero-init store + read-modify-write on step 0.
        acc_h[...] = ph
        acc_g[...] = pg

    @pl.when(k > 0)
    def _():
        acc_h[...] += ph
        acc_g[...] += pg

    @pl.when(k == pl.num_programs(2) - 1)
    def _():
        h = acc_h[...] + bh_ref[...]
        g = acc_g[...] + bg_ref[...]
        # Exact (erf-based) GELU, matching torch.nn.functional.gelu default.
        inv_sqrt2 = jnp.float32(0.7071067811865476)
        gelu_g = 0.5 * g * (1.0 + jax.lax.erf(g * inv_sqrt2))
        o_ref[...] = (h * gelu_g).astype(o_ref.dtype)


def _default_tiles_and_cores():
    """Per-generation defaults: (tm, tn, tk, num_parallel_cores)."""
    try:
        kind = jax.devices()[0].device_kind.lower()
    except Exception:
        kind = ""
    if "v7" in kind:
        # Higher HBM BW lowers the tm roofline threshold; 64 MiB VMEM caps tiles.
        return 512, 1024, 1024, 2
    if "v6" in kind:
        # ~918 TF/s / ~1.4 TB/s => need tm ~ 650+ to leave the HBM roofline.
        return 768, 1024, 1024, 1
    if "v5" in kind:
        # Already past v5e's roofline threshold (~240 FLOP/byte) at tm=256.
        return 256, 1024, 1024, 1
    return 512, 1024, 1024, 1


def pack_geglu_params(w, b, *, tn=1024, tk=1024, use_bf16=True):
    """Split / cast / zero-pad the projection weight & bias ONCE.

    w: (dim_in, 2*dim_out); b: (2*dim_out,).
    Returns ((w_h, w_g, b_h, b_g), dim_out); pass results to geglu_pallas_packed.
    """
    dim_in, two_dout = w.shape
    dout = two_dout // 2
    tn_eff = min(tn, _round_up(dout, 128))
    tk_eff = min(tk, _round_up(dim_in, 128))
    n_pad = _round_up(dout, tn_eff)
    k_pad = _round_up(dim_in, tk_eff)

    op_dtype = jnp.bfloat16 if use_bf16 else w.dtype
    pad_kn = ((0, k_pad - dim_in), (0, n_pad - dout))
    w_h = jnp.pad(w[:, :dout].astype(op_dtype), pad_kn)
    w_g = jnp.pad(w[:, dout:].astype(op_dtype), pad_kn)
    pad_n = ((0, 0), (0, n_pad - dout))
    b_h = jnp.pad(b[:dout].astype(jnp.float32).reshape(1, dout), pad_n)
    b_g = jnp.pad(b[dout:].astype(jnp.float32).reshape(1, dout), pad_n)
    return (w_h, w_g, b_h, b_g), dout


@functools.partial(
    jax.jit,
    static_argnames=("dout", "tm", "tn", "tk", "use_bf16", "out_dtype", "num_cores"),
)
def geglu_pallas_packed(x, w_h, w_g, b_h, b_g, *, dout, tm, tn, tk,
                        use_bf16=True, out_dtype=None, num_cores=1):
    """x: (..., dim_in); w_h/w_g/b_h/b_g from pack_geglu_params."""
    orig_shape = x.shape
    dim_in = orig_shape[-1]
    out_dt = jnp.dtype(out_dtype) if out_dtype is not None else x.dtype

    k_pad, n_pad = w_h.shape  # already padded by pack_geglu_params
    x2d = x.reshape(-1, dim_in)
    m = x2d.shape[0]

    op_dtype = jnp.bfloat16 if use_bf16 else x2d.dtype
    # bf16 packs two rows per sublane: native row tile is 16 (8 for f32).
    row_align = 16 if op_dtype == jnp.bfloat16 else 8

    tn_eff = min(tn, n_pad)
    tk_eff = min(tk, k_pad)
    tm_eff = min(tm, _round_up(m, row_align))
    m_pad = _round_up(m, tm_eff)

    # 2-TC chips (v7x): don't let clamping collapse the parallel (i, j) grid to 1x1.
    if (num_cores > 1 and m_pad // tm_eff == 1 and n_pad // tn_eff == 1
            and m >= 2 * row_align):
        tm_eff = _round_up(-(-m // num_cores), row_align)
        m_pad = _round_up(m, tm_eff)

    # x-side cast/pad only (weights were packed once, outside this call).
    x2d = x2d.astype(op_dtype)
    if m_pad != m or k_pad != dim_in:
        x2d = jnp.pad(x2d, ((0, m_pad - m), (0, k_pad - dim_in)))

    grid = (m_pad // tm_eff, n_pad // tn_eff, k_pad // tk_eff)

    # VMEM budget from actual footprint: double-buffered (x, wh, wg, out, biases)
    # + two resident f32 accumulators + headroom.
    op_b = jnp.dtype(op_dtype).itemsize
    out_b = out_dt.itemsize
    tile_bytes = (tm_eff * tk_eff * op_b            # x tile
                  + 2 * tk_eff * tn_eff * op_b      # two weight tiles
                  + tm_eff * tn_eff * out_b         # output tile
                  + 2 * tn_eff * 4)                 # two bias rows
    vmem_limit = int(2 * tile_bytes * 1.25) + 2 * tm_eff * tn_eff * 4 + (4 << 20)
    vmem_limit = min(vmem_limit, 100 * 1024 * 1024)

    out2d = pl.pallas_call(
        _geglu_kernel,
        out_shape=jax.ShapeDtypeStruct((m_pad, n_pad), out_dt),
        grid_spec=pltpu.PrefetchScalarGridSpec(
            num_scalar_prefetch=0,
            grid=grid,
            in_specs=[
                pl.BlockSpec((tm_eff, tk_eff), lambda i, j, k: (i, k)),
                pl.BlockSpec((tk_eff, tn_eff), lambda i, j, k: (k, j)),
                pl.BlockSpec((tk_eff, tn_eff), lambda i, j, k: (k, j)),
                pl.BlockSpec((1, tn_eff), lambda i, j, k: (0, j)),
                pl.BlockSpec((1, tn_eff), lambda i, j, k: (0, j)),
            ],
            out_specs=pl.BlockSpec((tm_eff, tn_eff), lambda i, j, k: (i, j)),
            scratch_shapes=[
                pltpu.VMEM((tm_eff, tn_eff), jnp.float32),
                pltpu.VMEM((tm_eff, tn_eff), jnp.float32),
            ],
        ),
        compiler_params=pltpu.CompilerParams(
            dimension_semantics=("parallel", "parallel", "arbitrary"),
            vmem_limit_bytes=vmem_limit,
        ),
    )(x2d, w_h, w_g, b_h, b_g)

    out2d = out2d[:m, :dout]
    return out2d.reshape(*orig_shape[:-1], dout)


def geglu_pallas(x, w, b, *, tm=None, tn=None, tk=None, use_bf16=True, out_dtype=None):
    """Convenience wrapper (packs weights on every call). For repeated calls with
    fixed weights, call pack_geglu_params once and use geglu_pallas_packed."""
    d_tm, d_tn, d_tk, num_cores = _default_tiles_and_cores()
    tm = d_tm if tm is None else tm
    tn = d_tn if tn is None else tn
    tk = d_tk if tk is None else tk
    (w_h, w_g, b_h, b_g), dout = pack_geglu_params(w, b, tn=tn, tk=tk, use_bf16=use_bf16)
    return geglu_pallas_packed(x, w_h, w_g, b_h, b_g, dout=dout, tm=tm, tn=tn, tk=tk,
                               use_bf16=use_bf16, out_dtype=out_dtype,
                               num_cores=num_cores)


def geglu_ref(x, w, b):
    proj = jnp.dot(x, w) + b
    dout = w.shape[1] // 2
    h, g = proj[..., :dout], proj[..., dout:]
    return h * jax.nn.gelu(g, approximate=False)


if __name__ == "__main__":
    key = jax.random.PRNGKey(0)
    batch, seq, dim_in, dim_out = 2, 8, 128, 128

    k_x, k_w, k_b = jax.random.split(key, 3)
    x = jax.random.normal(k_x, (batch, seq, dim_in), dtype=jnp.float32)
    # nn.Linear-style uniform init, deterministic.
    bound = 1.0 / (dim_in ** 0.5)
    w = jax.random.uniform(k_w, (dim_in, 2 * dim_out), jnp.float32, -bound, bound)
    b = jax.random.uniform(k_b, (2 * dim_out,), jnp.float32, -bound, bound)

    ref = geglu_ref(x, w, b)

    # Default (bf16 MXU operands, f32 accumulation): relaxed tolerance vs f32 ref.
    out = geglu_pallas(x, w, b)
    jax.block_until_ready(out)
    assert out.shape == (batch, seq, dim_out)
    assert jnp.allclose(out, ref, atol=2e-2, rtol=2e-2)

    # Pure-f32 path: tight tolerance (matches torch fp32 Linear+GELU semantics).
    out_f32 = geglu_pallas(x, w, b, use_bf16=False)
    jax.block_until_ready(out_f32)
    assert jnp.allclose(out_f32, ref, atol=1e-5, rtol=1e-5)

    # Pre-packed weight path (the intended hot-path API) + bf16 output writeback.
    d_tm, d_tn, d_tk, n_cores = _default_tiles_and_cores()
    packed, dout = pack_geglu_params(w, b, tn=d_tn, tk=d_tk, use_bf16=True)
    out_packed = geglu_pallas_packed(x, *packed, dout=dout, tm=d_tm, tn=d_tn, tk=d_tk,
                                     use_bf16=True, out_dtype=jnp.bfloat16,
                                     num_cores=n_cores)
    jax.block_until_ready(out_packed)
    assert out_packed.dtype == jnp.bfloat16
    assert jnp.allclose(out_packed.astype(jnp.float32), ref, atol=3e-2, rtol=3e-2)

    # Exercise the padding path (row count not a multiple of the tile).
    x_odd = jax.random.normal(k_x, (2, 7, dim_in), dtype=jnp.float32)
    out_odd = geglu_pallas(x_odd, w, b)
    jax.block_until_ready(out_odd)
    assert out_odd.shape == (2, 7, dim_out)
    assert jnp.allclose(out_odd, geglu_ref(x_odd, w, b), atol=2e-2, rtol=2e-2)

    print("KERNEL_OK")
</pallas_src>

<mosaic_0001>
module attributes {stable_mosaic.version = 11 : i64} {
  func.func @_geglu_kernel(%arg0: i32, %arg1: i32, %arg2: i32, %arg3: memref<16x128xbf16, #tpu.memory_space<vmem>>, %arg4: memref<128x128xbf16, #tpu.memory_space<vmem>>, %arg5: memref<128x128xbf16, #tpu.memory_space<vmem>>, %arg6: memref<1x128xf32, #tpu.memory_space<vmem>>, %arg7: memref<1x128xf32, #tpu.memory_space<vmem>>, %arg8: memref<16x128xf32, #tpu.memory_space<vmem>>, %arg9: memref<16x128xf32, #tpu.memory_space<vmem>>, %arg10: memref<16x128xf32, #tpu.memory_space<vmem>>) attributes {dimension_semantics = [#tpu.dimension_semantics<parallel>, #tpu.dimension_semantics<parallel>, #tpu.dimension_semantics<arbitrary>], iteration_bounds = array<i64: 1, 1, 1>, scalar_prefetch = 0 : i64, scratch_operands = 2 : i64, tpu.core_type = #tpu.core_type<tc>, window_params = [{transform_indices = @transform_0, window_bounds = array<i64: 16, 128>}, {transform_indices = @transform_1, window_bounds = array<i64: 128, 128>}, {transform_indices = @transform_2, window_bounds = array<i64: 128, 128>}, {transform_indices = @transform_3, window_bounds = array<i64: 1, 128>}, {transform_indices = @transform_4, window_bounds = array<i64: 1, 128>}, {transform_indices = @transform_5, window_bounds = array<i64: 16, 128>}]} {
    %c0 = arith.constant 0 : index
    %c0_0 = arith.constant 0 : index
    %0 = vector.load %arg3[%c0, %c0_0] : memref<16x128xbf16, #tpu.memory_space<vmem>>, vector<16x128xbf16>
    %c0_1 = arith.constant 0 : index
    %c0_2 = arith.constant 0 : index
    %1 = vector.load %arg4[%c0_1, %c0_2] : memref<128x128xbf16, #tpu.memory_space<vmem>>, vector<128x128xbf16>
    %cst = arith.constant dense<0.000000e+00> : vector<16x128xf32>
    %2 = tpu.matmul %0, %1, %cst {dimension_numbers = #tpu.dot_dimension_numbers<[1], [0], [0], [1], [0, 0, 1, 1], [], []>} : vector<16x128xbf16>, vector<128x128xbf16>, vector<16x128xf32> -> vector<16x128xf32>
    %c0_3 = arith.constant 0 : index
    %c0_4 = arith.constant 0 : index
    %3 = vector.load %arg5[%c0_3, %c0_4] : memref<128x128xbf16, #tpu.memory_space<vmem>>, vector<128x128xbf16>
    %cst_5 = arith.constant dense<0.000000e+00> : vector<16x128xf32>
    %4 = tpu.matmul %0, %3, %cst_5 {dimension_numbers = #tpu.dot_dimension_numbers<[1], [0], [0], [1], [0, 0, 1, 1], [], []>} : vector<16x128xbf16>, vector<128x128xbf16>, vector<16x128xf32> -> vector<16x128xf32>
    %c0_i32 = arith.constant 0 : i32
    %5 = arith.cmpi eq, %arg2, %c0_i32 : i32
    %6 = arith.extui %5 : i1 to i32
    %c0_i32_6 = arith.constant 0 : i32
    %7 = arith.cmpi ne, %6, %c0_i32_6 : i32
    scf.if %7 {
      %c0_11 = arith.constant 0 : index
      %c0_12 = arith.constant 0 : index
      %14 = vector.load %arg9[%c0_11, %c0_12] : memref<16x128xf32, #tpu.memory_space<vmem>>, vector<16x128xf32>
      tpu.vector_store %arg9[%c0_11, %c0_12], %2 {strides = array<i32>} : memref<16x128xf32, #tpu.memory_space<vmem>>, vector<16x128xf32>,
      %c0_13 = arith.constant 0 : index
      %c0_14 = arith.constant 0 : index
      %15 = vector.load %arg10[%c0_13, %c0_14] : memref<16x128xf32, #tpu.memory_space<vmem>>, vector<16x128xf32>
      tpu.vector_store %arg10[%c0_13, %c0_14], %4 {strides = array<i32>} : memref<16x128xf32, #tpu.memory_space<vmem>>, vector<16x128xf32>,
    } else {
    }
    %c0_i32_7 = arith.constant 0 : i32
    %8 = arith.cmpi sgt, %arg2, %c0_i32_7 : i32
    %9 = arith.extui %8 : i1 to i32
    %c0_i32_8 = arith.constant 0 : i32
    %10 = arith.cmpi ne, %9, %c0_i32_8 : i32
    scf.if %10 {
      %c0_11 = arith.constant 0 : index
      %c0_12 = arith.constant 0 : index
      %14 = vector.load %arg9[%c0_11, %c0_12] : memref<16x128xf32, #tpu.memory_space<vmem>>, vector<16x128xf32>
      %15 = arith.addf %14, %2 : vector<16x128xf32>
      %c0_13 = arith.constant 0 : index
      %c0_14 = arith.constant 0 : index
      %16 = vector.load %arg9[%c0_13, %c0_14] : memref<16x128xf32, #tpu.memory_space<vmem>>, vector<16x128xf32>
      tpu.vector_store %arg9[%c0_13, %c0_14], %15 {strides = array<i32>} : memref<16x128xf32, #tpu.memory_space<vmem>>, vector<16x128xf32>,
      %c0_15 = arith.constant 0 : index
      %c0_16 = arith.constant 0 : index
      %17 = vector.load %arg10[%c0_15, %c0_16] : memref<16x128xf32, #tpu.memory_space<vmem>>, vector<16x128xf32>
      %18 = arith.addf %17, %4 : vector<16x128xf32>
      %c0_17 = arith.constant 0 : index
      %c0_18 = arith.constant 0 : index
      %19 = vector.load %arg10[%c0_17, %c0_18] : memref<16x128xf32, #tpu.memory_space<vmem>>, vector<16x128xf32>
      tpu.vector_store %arg10[%c0_17, %c0_18], %18 {strides = array<i32>} : memref<16x128xf32, #tpu.memory_space<vmem>>, vector<16x128xf32>,
    } else {
    }
    %c0_i32_9 = arith.constant 0 : i32
    %11 = arith.cmpi eq, %arg2, %c0_i32_9 : i32
    %12 = arith.extui %11 : i1 to i32
    %c0_i32_10 = arith.constant 0 : i32
    %13 = arith.cmpi ne, %12, %c0_i32_10 : i32
    scf.if %13 {
      %c0_11 = arith.constant 0 : index
      %c0_12 = arith.constant 0 : index
      %14 = vector.load %arg9[%c0_11, %c0_12] : memref<16x128xf32, #tpu.memory_space<vmem>>, vector<16x128xf32>
      %c0_13 = arith.constant 0 : index
      %c0_14 = arith.constant 0 : index
      %15 = vector.load %arg6[%c0_13, %c0_14] : memref<1x128xf32, #tpu.memory_space<vmem>>, vector<1x128xf32>
      %16 = vector.broadcast %15 : vector<1x128xf32> to vector<16x128xf32>
      %17 = arith.addf %14, %16 : vector<16x128xf32>
      %c0_15 = arith.constant 0 : index
      %c0_16 = arith.constant 0 : index
      %18 = vector.load %arg10[%c0_15, %c0_16] : memref<16x128xf32, #tpu.memory_space<vmem>>, vector<16x128xf32>
      %c0_17 = arith.constant 0 : index
      %c0_18 = arith.constant 0 : index
      %19 = vector.load %arg7[%c0_17, %c0_18] : memref<1x128xf32, #tpu.memory_space<vmem>>, vector<1x128xf32>
      %20 = vector.broadcast %19 : vector<1x128xf32> to vector<16x128xf32>
      %21 = arith.addf %18, %20 : vector<16x128xf32>
      %cst_19 = arith.constant 5.000000e-01 : f32
      %22 = vector.broadcast %cst_19 : f32 to vector<16x128xf32>
      %23 = arith.mulf %22, %21 : vector<16x128xf32>
      %cst_20 = arith.constant 0.707106769 : f32
      %24 = vector.broadcast %cst_20 : f32 to vector<16x128xf32>
      %25 = arith.mulf %21, %24 : vector<16x128xf32>
      %26 = math.erf %25 : vector<16x128xf32>
      %cst_21 = arith.constant 1.000000e+00 : f32
      %27 = vector.broadcast %cst_21 : f32 to vector<16x128xf32>
      %28 = arith.addf %27, %26 : vector<16x128xf32>
      %29 = arith.mulf %23, %28 : vector<16x128xf32>
      %30 = arith.mulf %17, %29 : vector<16x128xf32>
      %c0_22 = arith.constant 0 : index
      %c0_23 = arith.constant 0 : index
      %31 = vector.load %arg8[%c0_22, %c0_23] : memref<16x128xf32, #tpu.memory_space<vmem>>, vector<16x128xf32>
      tpu.vector_store %arg8[%c0_22, %c0_23], %30 {strides = array<i32>} : memref<16x128xf32, #tpu.memory_space<vmem>>, vector<16x128xf32>,
    } else {
    }
    return
  }
  func.func @transform_0(%arg0: i32, %arg1: i32, %arg2: i32) -> (i32, i32) {
    %c0_i32 = arith.constant 0 : i32
    return %arg0, %arg2 : i32, i32
  }
  func.func @transform_1(%arg0: i32, %arg1: i32, %arg2: i32) -> (i32, i32) {
    %c0_i32 = arith.constant 0 : i32
    return %arg2, %arg1 : i32, i32
  }
  func.func @transform_2(%arg0: i32, %arg1: i32, %arg2: i32) -> (i32, i32) {
    %c0_i32 = arith.constant 0 : i32
    return %arg2, %arg1 : i32, i32
  }
  func.func @transform_3(%arg0: i32, %arg1: i32, %arg2: i32) -> (i32, i32) {
    %c0_i32 = arith.constant 0 : i32
    %c0_i32_0 = arith.constant 0 : i32
    return %c0_i32, %arg1 : i32, i32
  }
  func.func @transform_4(%arg0: i32, %arg1: i32, %arg2: i32) -> (i32, i32) {
    %c0_i32 = arith.constant 0 : i32
    %c0_i32_0 = arith.constant 0 : i32
    return %c0_i32, %arg1 : i32, i32
  }
  func.func @transform_5(%arg0: i32, %arg1: i32, %arg2: i32) -> (i32, i32) {
    %c0_i32 = arith.constant 0 : i32
    return %arg0, %arg1 : i32, i32
  }
}

</mosaic_0001>

<bundles_post_ra>
// kernel: geglu_pallas_packed.1
= control target key start
LH: loop header
LB: loop body
LE: loop exit
PB: predicated region body
PF: predicated region fallthrough
CT: control target
= control target key end

     0   :  { %10 = vsyncpa [#allocation5], 0  ;;  %s618_s0 = inlined_call_operand.vmem [shape: bf16[16,128], index: 0, kind: input, shape index: {}]   ;;  %s619_s1 = inlined_call_operand.hbm [shape: bf16[128,128], index: 1, kind: input, shape index: {}]   ;;  %s620_s2 = inlined_call_operand.hbm [shape: bf16[128,128], index: 2, kind: input, shape index: {}]   ;;  %s621_s3 = inlined_call_operand.vmem [shape: f32[1,128], index: 3, kind: input, shape index: {}]   ;;  %s622_s4 = inlined_call_operand.vmem [shape: f32[1,128], index: 4, kind: input, shape index: {}]   ;;  %s623_s5 = inlined_call_operand.hbm [shape: f32[16,128], index: 5, kind: output, shape index: {}]  }
   0x1   :  { %11 = vsyncpa [#allocation8], 0 }
   0x2   :  { %12 = vsyncpa [#allocation6], 0  ;;  %s19_s20 = sshll.u32 %s619_s1, 4  ;;  %s550_s21 = smov [#allocation4]   ;;  %s20_s20 = int_to_ptr.hbm [resolvable:$true] %s19_s20 }
   0x3   :  { %s21_s22 = sshll.u32 %s550_s21, 4  ;;  %s32_s25 = sshll.u32 %s620_s2, 4  ;;  %s22_s22 = int_to_ptr.vmem [resolvable:$true] %s21_s22  ;;  %s33_s25 = int_to_ptr.hbm [resolvable:$true] %s32_s25 }
   0x4   :  { %s551_s26 = smov 64   ;;  %s552_s27 = smov 4  }
   0x5   :  { %27 = dma.hbm_to_vmem [thread:$0]  %s20_s20, 1024, %s22_s22, [#allocation5], %s551_s26, %s551_s26, %s552_s27  }
   0x6   :  { %s553_s28 = smov [#allocation7]  }
   0x7   :  { %s34_s29 = sshll.u32 %s553_s28, 4  ;;  %s35_s29 = int_to_ptr.vmem [resolvable:$true] %s34_s29 }
   0x8   :  { %40 = dma.hbm_to_vmem [thread:$0]  %s33_s25, 1024, %s35_s29, [#allocation8], %s551_s26, %s551_s26, %s552_s27  }
   0x9   :  { %544 = dma.done.wait [#allocation5], 1024  }
   0xa   :  { %545 = vsyncadd [#allocation5], 4294966272 }
   0xb   :  { %546 = dma.done.wait [#allocation8], 1024  }
   0xc   :  { %547 = vsyncadd [#allocation8], 4294966272  ;;  %v458_v0 = vld [vmem:[#allocation7 + $0x38] sm:$0xff]  ;;  %v457_v1 = vld [vmem:[#allocation7 + $0x30] sm:$0xff]  ;;  %s358_s10 = sshll.u32 %s623_s5, 4  ;;  %s555_s11 = smov 128   ;;  %s359_s10 = int_to_ptr.hbm [resolvable:$true] %s358_s10 }
   0xd   :  { %203 = vmatpush.bf16.msra.mxu1 %v458_v0  ;;  %v450_v2 = vld [vmem:[#allocation4 + $0x38] sm:$0xff]  ;;  %v449_v3 = vld [vmem:[#allocation4 + $0x30] sm:$0xff]  ;;  %v456_v4 = vld [vmem:[#allocation7 + $0x28] sm:$0xff]  ;;  %s556_s12 = smov 8  }
   0xe   :  { %125 = vmatpush.bf16.msra.mxu0 %v450_v2  ;;  %v448_v5 = vld [vmem:[#allocation4 + $0x28] sm:$0xff]  ;;  %v455_v6 = vld [vmem:[#allocation7 + $0x20] sm:$0xff]  ;;  %v454_v8 = vld [vmem:[#allocation7 + $0x18] sm:$0xff] }
   0xf   :  { %v447_v7 = vld [vmem:[#allocation4 + $0x20] sm:$0xff]  ;;  %v446_v9 = vld [vmem:[#allocation4 + $0x18] sm:$0xff]  ;;  %v453_v10 = vld [vmem:[#allocation7 + $0x10] sm:$0xff] }
  0x10   :  { %v445_v11 = vld [vmem:[#allocation4 + $0x10] sm:$0xff]  ;;  %v452_v12 = vld [vmem:[#allocation7 + $0x8] sm:$0xff]  ;;  %v451_v14 = vld [vmem:[#allocation7] sm:$0xff] }
  0x11   :  { %204 = vmatpush.bf16.msra.mxu1 %v457_v1  ;;  %v444_v13 = vld [vmem:[#allocation4 + $0x8] sm:$0xff]  ;;  %v442_v15 = vld [vmem:[%s618_s0] sm:$0xff] }
  0x12   :  { %126 = vmatpush.bf16.msra.mxu0 %v449_v3  ;;  %v443_v16 = vld [vmem:[#allocation4] sm:$0xff] }
  0x13   :  { %v466_v17 = vld [vmem:[%s622_s4] ss:$0 sm:$0xff] }
  0x15   :  { %205 = vmatpush.bf16.msra.mxu1 %v456_v4 }
  0x16   :  { %127 = vmatpush.bf16.msra.mxu0 %v448_v5 }
  0x19   :  { %206 = vmatpush.bf16.msra.mxu1 %v455_v6 }
  0x1a   :  { %128 = vmatpush.bf16.msra.mxu0 %v447_v7 }
  0x1d   :  { %207 = vmatpush.bf16.msra.mxu1 %v454_v8 }
  0x1e   :  { %129 = vmatpush.bf16.msra.mxu0 %v446_v9 }
  0x21   :  { %208 = vmatpush.bf16.msra.mxu1 %v453_v10 }
  0x22   :  { %130 = vmatpush.bf16.msra.mxu0 %v445_v11 }
  0x25   :  { %209 = vmatpush.bf16.msra.mxu1 %v452_v12 }
  0x26   :  { %131 = vmatpush.bf16.msra.mxu0 %v444_v13 }
  0x29   :  { %210 = vmatpush.bf16.msra.mxu1 %v451_v14 }
  0x2a   :  { %132 = vmatpush.bf16.msra.mxu0 %v443_v16 }
  0x2c   :  { %211 = vmatmul.bf16.vlgmr.msra.gmra.mxu1 %v442_v15 }
  0x2d   :  { %133 = vmatmul.bf16.vlgmr.msra.gmra.mxu0 %v442_v15 }
  0xa9   :  { %v212_v18 = vpop.f32.mrf.mxu1 }
  0xaa   :  { %v599_v19 = vadd.f32 %v466_v17, %v212_v18 }
  0xac   :  { %v262_v20 = vmul.f32 0.70710677, %v599_v19 }
  0xae   :  { %v264_v21 = vmul.f32 %v262_v20, %v262_v20 }
  0xb0   :  { %v265_v22 = vmin.f32 %v264_v21, 16.0 }
  0xb1   :  { %v214_v23 = vpop.f32.mrf.mxu1 }
  0xb2   :  { %v266_v24 = vmul.f32 2.1237322e-06, %v265_v22  ;;  %v277_v25 = vmul.f32 3.8918573e-05, %v265_v22  ;;  %v602_v26 = vadd.f32 %v466_v17, %v214_v23  ;;  %v467_v17 = vld [vmem:[%s621_s3] ss:$0 sm:$0xff] }
  0xb3   :  { %s554_s3 = smov [#allocation9]  }
  0xb4   :  { %v267_v27 = vadd.f32 0.00028619796, %v266_v24  ;;  %v278_v28 = vadd.f32 0.001143296, %v277_v25  ;;  %v605_v29 = vmul.f32 0.70710677, %v602_v26 }
  0xb5   :  { %s356_s7 = sshll.u32 %s554_s3, 4  ;;  %s357_s7 = int_to_ptr.vmem [resolvable:$true] %s356_s7 }
  0xb6   :  { %v268_v30 = vmul.f32 %v267_v27, %v265_v22  ;;  %v279_v31 = vmul.f32 %v278_v28, %v265_v22  ;;  %v304_v32 = vmul.f32 %v605_v29, %v605_v29 }
  0xb8   :  { %v280_v33 = vadd.f32 0.014752088, %v279_v31  ;;  %v269_v34 = vadd.f32 0.0036580483, %v268_v30  ;;  %v305_v35 = vmin.f32 %v304_v32, 16.0 }
  0xba   :  { %v281_v36 = vmul.f32 %v280_v33, %v265_v22  ;;  %v306_v37 = vmul.f32 2.1237322e-06, %v305_v35  ;;  %v317_v38 = vmul.f32 3.8918573e-05, %v305_v35  ;;  %v270_v40 = vmul.f32 %v269_v34, %v265_v22 }
  0xbc   :  { %v282_v39 = vadd.f32 0.112945676, %v281_v36  ;;  %v307_v41 = vadd.f32 0.00028619796, %v306_v37  ;;  %v318_v42 = vadd.f32 0.001143296, %v317_v38 }
  0xbd   :  { %v271_v47 = vadd.f32 0.05243302, %v270_v40 }
  0xbe   :  { %v283_v43 = vmul.f32 %v282_v39, %v265_v22  ;;  %v308_v44 = vmul.f32 %v307_v41, %v305_v35  ;;  %v319_v45 = vmul.f32 %v318_v42, %v305_v35  ;;  %v261_v41 = vmul.f32 0.5, %v602_v26 }
  0xbf   :  { %v272_v53 = vmul.f32 %v271_v47, %v265_v22 }
  0xc0   :  { %v284_v46 = vadd.f32 0.4994258, %v283_v43  ;;  %v320_v48 = vadd.f32 0.014752088, %v319_v45  ;;  %v309_v50 = vadd.f32 0.0036580483, %v308_v44 }
  0xc1   :  { %v273_v57 = vadd.f32 0.18741608, %v272_v53 }
  0xc2   :  { %v285_v49 = vmul.f32 %v284_v46, %v265_v22  ;;  %v321_v51 = vmul.f32 %v320_v48, %v305_v35  ;;  %v310_v55 = vmul.f32 %v309_v50, %v305_v35 }
  0xc3   :  { %v274_v62 = vmul.f32 %v273_v57, %v265_v22  ;;  %v134_v22 = vpop.f32.mrf.mxu0 }
  0xc4   :  { %v286_v52 = vadd.f32 1.0, %v285_v49  ;;  %v322_v54 = vadd.f32 0.112945676, %v321_v51  ;;  %v311_v59 = vadd.f32 0.05243302, %v310_v55  ;;  %v250_v28 = vadd.f32 %v467_v17, %v134_v22 }
  0xc5   :  { %v275_v4 = vadd.f32 1.1283791, %v274_v62 }
  0xc6   :  { %468 = vrcp.f32 %v286_v52  ;;  %v323_v56 = vmul.f32 %v322_v54, %v305_v35  ;;  %v312_v1 = vmul.f32 %v311_v59, %v305_v35  ;;  %v298_v3 = vand.u32 2147483648, %v286_v52 }
  0xc7   :  { %v296_v6 = vand.u32 2147483647, %v286_v52  ;;  %vm292_vm1 = vweird.f32 %v286_v52  ;;  %v276_v11 = vmul.f32 %v275_v4, %v262_v20  ;;  %v260_v20 = vmul.f32 0.5, %v599_v19 }
  0xc8   :  { %v324_v58 = vadd.f32 0.4994258, %v323_v56  ;;  %v313_v7 = vadd.f32 0.18741608, %v312_v1  ;;  %v299_v9 = vor.u32 1.1754944e-38, %v298_v3 }
  0xc9   :  { %vm297_vm3 = vcmp.eq.f32.partialorder %v296_v6, 8.507059e+37 }
  0xca   :  { %v325_v60 = vmul.f32 %v324_v58, %v305_v35  ;;  %v314_v14 = vmul.f32 %v313_v7, %v305_v35 }
  0xcb   :  { %v136_v40 = vpop.f32.mrf.mxu0 }
  0xcc   :  { %v469_v61 = vpop.eup %468  ;;  %v326_v0 = vadd.f32 1.0, %v325_v60  ;;  %v315_v24 = vadd.f32 1.1283791, %v314_v14  ;;  %v251_v42 = vadd.f32 %v467_v17, %v136_v40 }
  0xcd   :  { %v288_v63 = vmul.f32 %v469_v61, %v286_v52  ;;  %vm293_vm0 = vweird.f32 %v469_v61 }
  0xce   :  { %470 = vrcp.f32 %v326_v0  ;;  %vm294_vm2 = vmor %vm292_vm1, %vm293_vm0  ;;  %v338_v21 = vand.u32 2147483648, %v326_v0  ;;  %v336_v27 = vand.u32 2147483647, %v326_v0  ;;  %vm332_vm5 = vweird.f32 %v326_v0 }
  0xcf   :  { %v289_v2 = vsub.f32 1.0, %v288_v63  ;;  %v316_v34 = vmul.f32 %v315_v24, %v605_v29 }
  0xd0   :  { %v339_v32 = vor.u32 1.1754944e-38, %v338_v21  ;;  %vm337_vm7 = vcmp.eq.f32.partialorder %v336_v27, 8.507059e+37 }
  0xd1   :  { %v290_v5 = vmul.f32 %v469_v61, %v289_v2 }
  0xd3   :  { %v291_v8 = vadd.f32 %v469_v61, %v290_v5 }
  0xd4   :  { %v471_v10 = vpop.eup %470 }
  0xd5   :  { %v295_v12 = vsel %vm294_vm2, %v469_v61, %v291_v8  ;;  %v328_v15 = vmul.f32 %v471_v10, %v326_v0  ;;  %vm333_vm4 = vweird.f32 %v471_v10 }
  0xd6   :  { %v300_v13 = vsel %vm297_vm3, %v299_v9, %v295_v12  ;;  %vm334_vm6 = vmor %vm332_vm5, %vm333_vm4 }
  0xd7   :  { %v301_v16 = vmul.f32 %v300_v13, %v276_v11  ;;  %v329_v18 = vsub.f32 1.0, %v328_v15 }
  0xd9   :  { %v440_v23 = vclamps-f32 %v301_v16, 1.0  ;;  %v330_v25 = vmul.f32 %v471_v10, %v329_v18 }
  0xdb   :  { %v344_v30 = vadd.f32 1.0, %v440_v23  ;;  %v331_v31 = vadd.f32 %v471_v10, %v330_v25 }
  0xdd   :  { %v346_v33 = vmul.f32 %v344_v30, %v260_v20  ;;  %v335_v35 = vsel %vm334_vm6, %v471_v10, %v331_v31 }
  0xde   :  { %v340_v36 = vsel %vm337_vm7, %v339_v32, %v335_v35 }
  0xdf   :  { %v348_v37 = vmul.f32 %v346_v33, %v250_v28  ;;  %v341_v38 = vmul.f32 %v340_v36, %v316_v34 }
  0xe1   :  { %350 = vst [vmem:[#allocation9] sm:$0xff] %v348_v37  ;;  %v441_v39 = vclamps-f32 %v341_v38, 1.0 }
  0xe3   :  { %v345_v19 = vadd.f32 1.0, %v441_v39 }
  0xe5   :  { %v347_v43 = vmul.f32 %v345_v19, %v261_v41 }
  0xe7   :  { %v349_v29 = vmul.f32 %v347_v43, %v251_v42 }
  0xe9   :  { %351 = vst [vmem:[#allocation9 + $0x8] sm:$0xff] %v349_v29 }
  0xea   :  { %364 = dma.vmem_to_hbm [thread:$0]  %s357_s7, 256, %s359_s10, [#allocation6], %s555_s11, %s555_s11, %s556_s12  }
  0xeb   :  { %548 = dma.done.wait [#allocation6], 256  }
  0xec   :  { %549 = vsyncadd [#allocation6], 4294967040 }
  0xed   :  { %369 = vsyncpa [#allocation5], 1 }
  0xee   :  { %370 = vsyncpa [#allocation8], 1 }
  0xef   :  { %371 = vsyncpa [#allocation6], 1 }

</bundles_post_ra>
